<compile_context>
chip_gen: v5e
topology: v5e:2x2
jax: 0.10.0
libtpu: 0.0.40
codegen_flags: <defaults>
</compile_context>

<pallas_src>
import functools

import jax
import jax.numpy as jnp
from jax import lax
from jax.experimental import pallas as pl
from jax.experimental.pallas import tpu as pltpu

EPSILON = 1e-4

# murmur3-style 32-bit mixing constants (signed-int32 representations).
_HC1 = -1640531527    # 0x9E3779B9
_HC2 = -2048144789    # 0x85EBCA6B
_HC3 = -1028477387    # 0xC2B2AE35


def _round_up(x, m):
    return ((x + m - 1) // m) * m


def _lsr(h, k):
    """Logical right shift on int32 values (arithmetic shift + sign-bit mask)."""
    return jnp.right_shift(h, k) & jnp.int32((1 << (32 - k)) - 1)


def _pair_hash31(gi, gj, salt):
    """Stateless 31-bit hash of (global row, global col, salt).

    Plain int32 VALU ops only: lowers under both Mosaic and interpret mode and
    is bit-identical on host, so the stochastic clamp is exactly reproducible
    and independent of the kernel tiling.
    """
    h = gi * jnp.int32(_HC1) + gj * jnp.int32(_HC2) + salt
    h = h ^ _lsr(h, 16)
    h = h * jnp.int32(_HC2)
    h = h ^ _lsr(h, 13)
    h = h * jnp.int32(_HC3)
    h = h ^ _lsr(h, 16)
    return h & jnp.int32(0x7FFFFFFF)


def _bern_threshold31(clamp_prob):
    """P(hash31 < thresh) == clamp_prob."""
    t = int(round(float(clamp_prob) * 2147483648.0))
    return max(0, min(2 ** 31 - 1, t))


def _fape_kernel(seed_ref, a_ref, t_ref, mj_ref, out_ref, *,
                 d_clamp, clamp_prob, thresh31):
    """One (batch, i-tile, j-tile) grid step.

    seed_ref : SMEM (1,) int32 scalar-prefetch seed.
    a_ref    : (1, 3, TI, 8)  homogeneous frame rows  A_aug[k, i, :].
    t_ref    : (1, 8, TJ)     homogeneous translations T_aug[:, j].
    mj_ref   : (1, 1, TJ)     0/1 mask along the j (lane) axis.
    out_ref  : (1, TI, 128)   lane-dense per-i partial sums, accumulated over j.
    """
    j = pl.program_id(2)

    @pl.when(j == 0)
    def _():
        out_ref[...] = jnp.zeros_like(out_ref)

    ti = a_ref.shape[2]
    tj = t_ref.shape[2]

    t_aug = t_ref[0]                                   # (8, TJ)

    # Fused rotate-and-subtract: 3 small MXU matmuls with K = 8.
    d0 = jnp.dot(a_ref[0, 0], t_aug, preferred_element_type=jnp.float32)
    d_sq = d0 * d0
    for k in (1, 2):
        dk = jnp.dot(a_ref[0, k], t_aug, preferred_element_type=jnp.float32)
        d_sq = d_sq + dk * dk

    d = jnp.sqrt(d_sq + EPSILON)                       # (TI, TJ)

    if clamp_prob >= 1.0:                              # static branch: always clamp
        d_cl = jnp.minimum(d, d_clamp)
    elif clamp_prob <= 0.0:                            # static branch: never clamp
        d_cl = d
    else:                                              # stochastic pair clamping
        n = pl.program_id(0)
        i = pl.program_id(1)
        gi = lax.broadcasted_iota(jnp.int32, (ti, tj), 0) + i * ti
        gj = lax.broadcasted_iota(jnp.int32, (ti, tj), 1) + j * tj
        salt = seed_ref[0] + n * jnp.int32(1000003)
        bern = _pair_hash31(gi, gj, salt) < jnp.int32(thresh31)
        d_cl = jnp.where(bern, jnp.minimum(d, d_clamp), d)

    # Lane-dense accumulation: fold TJ into 128-lane groups with plain VALU
    # adds (no XLU reduce, no width-1 masked stores); the j-mask multiply is
    # fused into each chunk.  Final 128 -> 1 reduce happens in the wrapper.
    mj = mj_ref[0]                                     # (1, TJ)
    acc = out_ref[0]                                   # (TI, 128)
    for c in range(tj // 128):
        lo = c * 128
        acc = acc + d_cl[:, lo:lo + 128] * mj[:, lo:lo + 128]
    out_ref[0] = acc


def frame_alignment_loss(R_pred, t_pred, R_true, t_true, mask, *,
                         seed=0, d_clamp=10.0, scale=10.0, clamp_prob=0.9,
                         clamp_mode='pair', L1=None,
                         block_i=512, block_j=2048):
    """JAX/Pallas equivalent of FrameAlignmentLoss.forward (clamp_mode='pair')."""
    if L1 is not None:
        # TODO(synk): two-chain self/cross (L1) branch not implemented in the kernel path.
        raise NotImplementedError("L1 branch not implemented")
    if clamp_mode != 'pair':
        # TODO(synk): clamp_mode='data' (single per-batch clamp flag) not implemented.
        raise NotImplementedError("only clamp_mode='pair' is implemented")

    N, L, _ = t_pred.shape
    f32 = jnp.float32

    tp = t_pred.astype(f32)
    tt = t_true.astype(f32)
    # Center translations (p_local is invariant to a global shift of t); keeps
    # the matmul-minus-bias formulation well conditioned.
    tp = tp - jnp.mean(tp, axis=1, keepdims=True)
    tt = tt - jnp.mean(tt, axis=1, keepdims=True)
    Rp = R_pred.astype(f32)
    Rt = R_true.astype(f32)

    # Homogeneous-coordinate operands (O(N*L) wrapper work).
    bp = jnp.einsum('nlak,nla->nlk', Rp, tp)           # (N, L, 3)
    bt = jnp.einsum('nlak,nla->nlk', Rt, tt)
    Ap = jnp.transpose(Rp, (0, 3, 1, 2))               # (N, 3, L, 3): Ap[n,k,i,a]=Rp[n,i,a,k]
    At = jnp.transpose(Rt, (0, 3, 1, 2))
    bpT = jnp.transpose(bp, (0, 2, 1))[..., None]      # (N, 3, L, 1)
    btT = jnp.transpose(bt, (0, 2, 1))[..., None]
    a_aug = jnp.concatenate([Ap, -bpT, -At, btT], axis=-1)          # (N, 3, L, 8)

    ones = jnp.ones((N, 1, L), f32)
    t_aug = jnp.concatenate([jnp.transpose(tp, (0, 2, 1)), ones,
                             jnp.transpose(tt, (0, 2, 1)), ones], axis=1)  # (N, 8, L)

    mask_f = mask.astype(f32)

    # ---- Tiling -----------------------------------------------------------
    # Only the j (lane) axis needs 128-alignment; i (sublane) only needs 8.
    tj = min(_round_up(block_j, 128), _round_up(L, 128))
    ti = min(_round_up(block_i, 8), _round_up(L, 8))
    # Cap TI*TJ so the (TI, TJ) f32 intermediates stay inside scoped VMEM on
    # every generation (v5e 16 MiB default scoped, v7x 64 MiB physical).
    max_tile_elems = 512 * 1024
    if ti * tj > max_tile_elems:
        ti = max(8, (max_tile_elems // tj) // 8 * 8)
    li = _round_up(L, ti)
    # Megacore friendliness (v7x has 2 TCs): expose >= 2 parallel grid steps.
    if N * (li // ti) < 2 and L > 8:
        ti = _round_up((L + 1) // 2, 8)
        li = _round_up(L, ti)
    lj = _round_up(L, tj)

    a_aug = jnp.pad(a_aug, ((0, 0), (0, 0), (0, li - L), (0, 0)))
    t_aug = jnp.pad(t_aug, ((0, 0), (0, 0), (0, lj - L)))
    mask_j = jnp.pad(mask_f, ((0, 0), (0, lj - L))).reshape(N, 1, lj)

    kernel = functools.partial(
        _fape_kernel, d_clamp=float(d_clamp), clamp_prob=float(clamp_prob),
        thresh31=_bern_threshold31(clamp_prob))
    seed_arr = jnp.asarray([seed], jnp.int32)

    lanesum = pl.pallas_call(
        kernel,
        out_shape=jax.ShapeDtypeStruct((N, li, 128), f32),
        grid_spec=pltpu.PrefetchScalarGridSpec(
            num_scalar_prefetch=1,
            grid=(N, li // ti, lj // tj),
            in_specs=[
                pl.BlockSpec((1, 3, ti, 8), lambda n, i, j, s: (n, 0, i, 0)),
                pl.BlockSpec((1, 8, tj), lambda n, i, j, s: (n, 0, j)),
                pl.BlockSpec((1, 1, tj), lambda n, i, j, s: (n, 0, j)),
            ],
            out_specs=pl.BlockSpec((1, ti, 128), lambda n, i, j, s: (n, i, 0)),
        ),
        compiler_params=pltpu.CompilerParams(
            dimension_semantics=("parallel", "parallel", "arbitrary"),
            vmem_limit_bytes=32 * 1024 * 1024),
    )(seed_arr, a_aug, t_aug, mask_j)

    # Final 128 -> 1 lane reduce + rank-1 i-mask / pair count in the wrapper.
    rowsum = jnp.sum(lanesum, axis=-1)                  # (N, li)
    mask_i = jnp.pad(mask_f, ((0, 0), (0, li - L)))
    num = jnp.einsum('nl,nl->n', mask_i, rowsum)
    den = jnp.square(jnp.sum(mask_f, axis=1))
    # NOTE: reference produces NaN for a fully masked batch; we guard it.
    den = jnp.maximum(den, 1.0)
    return jnp.mean(num / den) / scale


def _bern_flags(N, L, seed, clamp_prob):
    """Host-side replica of the in-kernel hash-Bernoulli flags (bit-exact)."""
    thresh = _bern_threshold31(clamp_prob)
    gi = jnp.arange(L, dtype=jnp.int32)[None, :, None]
    gj = jnp.arange(L, dtype=jnp.int32)[None, None, :]
    salt = (jnp.int32(seed)
            + jnp.arange(N, dtype=jnp.int32)[:, None, None] * jnp.int32(1000003))
    h = _pair_hash31(gi, gj, salt)
    return (h < jnp.int32(thresh)).astype(jnp.float32)


def _reference_loss(R_pred, t_pred, R_true, t_true, mask, bern,
                    d_clamp=10.0, scale=10.0):
    """Pure-JAX reference mirroring the PyTorch forward with explicit clamp flags."""
    def local(R, t):
        diff = t[:, None, :, :] - t[:, :, None, :]                 # (N, i, j, a)
        return jnp.einsum('niak,nija->nijk', R, diff)              # R_i^T (t_j - t_i)

    d = jnp.sqrt(jnp.sum((local(R_pred, t_pred) - local(R_true, t_true)) ** 2,
                         axis=-1) + EPSILON)
    clamp_flag = (bern > 0.5) & (d > d_clamp)
    d_cl = jnp.where(clamp_flag, d_clamp, d)
    mp = (mask[:, :, None] * mask[:, None, :]) > 0.5
    loss = jnp.sum(jnp.where(mp, d_cl, 0.0), axis=(1, 2)) / jnp.sum(mp, axis=(1, 2))
    return jnp.mean(loss) / scale


if __name__ == "__main__":
    key = jax.random.PRNGKey(0)
    k1, k2, k3, k4, k5 = jax.random.split(key, 5)

    N, L = 2, 16
    d_clamp, scale, seed = 10.0, 10.0, 1234

    R_pred = jax.random.normal(k1, (N, L, 3, 3), jnp.float32)
    t_pred = jax.random.normal(k2, (N, L, 3), jnp.float32) * 5.0
    R_true = jax.random.normal(k3, (N, L, 3, 3), jnp.float32)
    t_true = jax.random.normal(k4, (N, L, 3), jnp.float32) * 5.0

    mask = (jax.random.uniform(k5, (N, L)) < 0.8).astype(jnp.float32)
    mask = mask.at[:, :4].set(1.0)   # guarantee non-empty mask per batch

    # Deterministic end points (always clamp / never clamp) and the stochastic
    # default (clamp_prob=0.9) are all checked against the pure-JAX reference.
    # The hash-based Bernoulli flags are replicated exactly on the host, so the
    # stochastic path is compared exactly too.
    cases = [
        (1.0, jnp.ones((N, L, L), jnp.float32)),
        (0.0, jnp.zeros((N, L, L), jnp.float32)),
        (0.9, _bern_flags(N, L, seed, 0.9)),
    ]
    for prob, bern in cases:
        loss = frame_alignment_loss(R_pred, t_pred, R_true, t_true, mask,
                                    seed=seed, d_clamp=d_clamp, scale=scale,
                                    clamp_prob=prob)
        loss = jax.block_until_ready(loss)
        ref = _reference_loss(R_pred, t_pred, R_true, t_true, mask, bern,
                              d_clamp, scale)
        assert bool(jnp.isfinite(loss)), (prob, loss)
        assert jnp.allclose(loss, ref, rtol=1e-4, atol=1e-4), (prob, loss, ref)

    print("KERNEL_OK")
</pallas_src>

<mosaic_0001>
module attributes {stable_mosaic.version = 11 : i64} {
  func.func @_fape_kernel(%arg0: i32, %arg1: i32, %arg2: i32, %arg3: memref<1xi32, #tpu.memory_space<smem>>, %arg4: memref<1x3x16x8xf32, #tpu.memory_space<vmem>>, %arg5: memref<1x8x128xf32, #tpu.memory_space<vmem>>, %arg6: memref<1x1x128xf32, #tpu.memory_space<vmem>>, %arg7: memref<1x16x128xf32, #tpu.memory_space<vmem>>) attributes {dimension_semantics = [#tpu.dimension_semantics<parallel>, #tpu.dimension_semantics<parallel>, #tpu.dimension_semantics<arbitrary>], iteration_bounds = array<i64: 2, 1, 1>, scalar_prefetch = 1 : i64, scratch_operands = 0 : i64, tpu.core_type = #tpu.core_type<tc>, window_params = [{transform_indices = @transform_0, window_bounds = array<i64: 1, 3, 16, 8>}, {transform_indices = @transform_1, window_bounds = array<i64: 1, 8, 128>}, {transform_indices = @transform_2, window_bounds = array<i64: 1, 1, 128>}, {transform_indices = @transform_3, window_bounds = array<i64: 1, 16, 128>}]} {
    %c0_i32 = arith.constant 0 : i32
    %0 = arith.cmpi eq, %arg2, %c0_i32 : i32
    %1 = arith.extui %0 : i1 to i32
    %c0_i32_0 = arith.constant 0 : i32
    %2 = arith.cmpi ne, %1, %c0_i32_0 : i32
    scf.if %2 {
      %cst_26 = arith.constant 0.000000e+00 : f32
      %34 = vector.broadcast %cst_26 : f32 to vector<1x16x128xf32>
      %c0_27 = arith.constant 0 : index
      %c0_28 = arith.constant 0 : index
      %c0_29 = arith.constant 0 : index
      %35 = vector.load %arg7[%c0_27, %c0_28, %c0_29] : memref<1x16x128xf32, #tpu.memory_space<vmem>>, vector<1x16x128xf32>
      tpu.vector_store %arg7[%c0_27, %c0_28, %c0_29], %34 {strides = array<i32>} : memref<1x16x128xf32, #tpu.memory_space<vmem>>, vector<1x16x128xf32>,
    } else {
    }
    %c0 = arith.constant 0 : index
    %c0_1 = arith.constant 0 : index
    %c0_2 = arith.constant 0 : index
    %3 = vector.load %arg5[%c0, %c0_1, %c0_2] : memref<1x8x128xf32, #tpu.memory_space<vmem>>, vector<1x8x128xf32>
    %4 = vector.shape_cast %3 : vector<1x8x128xf32> to vector<8x128xf32>
    %c0_3 = arith.constant 0 : index
    %c0_4 = arith.constant 0 : index
    %c0_5 = arith.constant 0 : index
    %c0_6 = arith.constant 0 : index
    %5 = vector.load %arg4[%c0_3, %c0_4, %c0_5, %c0_6] : memref<1x3x16x8xf32, #tpu.memory_space<vmem>>, vector<1x1x16x8xf32>
    %6 = vector.shape_cast %5 : vector<1x1x16x8xf32> to vector<16x8xf32>
    %cst = arith.constant dense<0.000000e+00> : vector<16x128xf32>
    %7 = tpu.matmul %6, %4, %cst {dimension_numbers = #tpu.dot_dimension_numbers<[1], [0], [0], [1], [0, 0, 1, 1], [], []>} : vector<16x8xf32>, vector<8x128xf32>, vector<16x128xf32> -> vector<16x128xf32>
    %8 = arith.mulf %7, %7 : vector<16x128xf32>
    %c0_7 = arith.constant 0 : index
    %c1 = arith.constant 1 : index
    %c0_8 = arith.constant 0 : index
    %c0_9 = arith.constant 0 : index
    %9 = vector.load %arg4[%c0_7, %c1, %c0_8, %c0_9] : memref<1x3x16x8xf32, #tpu.memory_space<vmem>>, vector<1x1x16x8xf32>
    %10 = vector.shape_cast %9 : vector<1x1x16x8xf32> to vector<16x8xf32>
    %cst_10 = arith.constant dense<0.000000e+00> : vector<16x128xf32>
    %11 = tpu.matmul %10, %4, %cst_10 {dimension_numbers = #tpu.dot_dimension_numbers<[1], [0], [0], [1], [0, 0, 1, 1], [], []>} : vector<16x8xf32>, vector<8x128xf32>, vector<16x128xf32> -> vector<16x128xf32>
    %12 = arith.mulf %11, %11 : vector<16x128xf32>
    %13 = arith.addf %8, %12 : vector<16x128xf32>
    %c0_11 = arith.constant 0 : index
    %c2 = arith.constant 2 : index
    %c0_12 = arith.constant 0 : index
    %c0_13 = arith.constant 0 : index
    %14 = vector.load %arg4[%c0_11, %c2, %c0_12, %c0_13] : memref<1x3x16x8xf32, #tpu.memory_space<vmem>>, vector<1x1x16x8xf32>
    %15 = vector.shape_cast %14 : vector<1x1x16x8xf32> to vector<16x8xf32>
    %cst_14 = arith.constant dense<0.000000e+00> : vector<16x128xf32>
    %16 = tpu.matmul %15, %4, %cst_14 {dimension_numbers = #tpu.dot_dimension_numbers<[1], [0], [0], [1], [0, 0, 1, 1], [], []>} : vector<16x8xf32>, vector<8x128xf32>, vector<16x128xf32> -> vector<16x128xf32>
    %17 = arith.mulf %16, %16 : vector<16x128xf32>
    %18 = arith.addf %13, %17 : vector<16x128xf32>
    %cst_15 = arith.constant 9.99999974E-5 : f32
    %19 = vector.broadcast %cst_15 : f32 to vector<16x128xf32>
    %20 = arith.addf %18, %19 : vector<16x128xf32>
    %21 = math.sqrt %20 : vector<16x128xf32>
    %cst_16 = arith.constant 1.000000e+01 : f32
    %22 = vector.broadcast %cst_16 : f32 to vector<16x128xf32>
    %23 = arith.minimumf %21, %22 : vector<16x128xf32>
    %c0_17 = arith.constant 0 : index
    %c0_18 = arith.constant 0 : index
    %c0_19 = arith.constant 0 : index
    %24 = vector.load %arg6[%c0_17, %c0_18, %c0_19] : memref<1x1x128xf32, #tpu.memory_space<vmem>>, vector<1x1x128xf32>
    %25 = vector.shape_cast %24 : vector<1x1x128xf32> to vector<1x128xf32>
    %c0_20 = arith.constant 0 : index
    %c0_21 = arith.constant 0 : index
    %c0_22 = arith.constant 0 : index
    %26 = vector.load %arg7[%c0_20, %c0_21, %c0_22] : memref<1x16x128xf32, #tpu.memory_space<vmem>>, vector<1x16x128xf32>
    %27 = vector.shape_cast %26 : vector<1x16x128xf32> to vector<16x128xf32>
    %28 = vector.broadcast %25 : vector<1x128xf32> to vector<16x128xf32>
    %29 = arith.mulf %23, %28 : vector<16x128xf32>
    %30 = arith.addf %27, %29 : vector<16x128xf32>
    %c0_23 = arith.constant 0 : index
    %c0_24 = arith.constant 0 : index
    %c0_25 = arith.constant 0 : index
    %31 = vector.load %arg7[%c0_23, %c0_24, %c0_25] : memref<1x16x128xf32, #tpu.memory_space<vmem>>, vector<1x16x128xf32>
    %32 = vector.shape_cast %31 : vector<1x16x128xf32> to vector<16x128xf32>
    %33 = vector.shape_cast %30 : vector<16x128xf32> to vector<1x16x128xf32>
    tpu.vector_store %arg7[%c0_23, %c0_24, %c0_25], %33 {strides = array<i32>} : memref<1x16x128xf32, #tpu.memory_space<vmem>>, vector<1x16x128xf32>,
    return
  }
  func.func @transform_0(%arg0: i32, %arg1: i32, %arg2: i32, %arg3: memref<1xi32, #tpu.memory_space<smem>>) -> (i32, i32, i32, i32) {
    %c0_i32 = arith.constant 0 : i32
    %c0_i32_0 = arith.constant 0 : i32
    %c0_i32_1 = arith.constant 0 : i32
    return %arg0, %c0_i32, %arg1, %c0_i32_0 : i32, i32, i32, i32
  }
  func.func @transform_1(%arg0: i32, %arg1: i32, %arg2: i32, %arg3: memref<1xi32, #tpu.memory_space<smem>>) -> (i32, i32, i32) {
    %c0_i32 = arith.constant 0 : i32
    %c0_i32_0 = arith.constant 0 : i32
    return %arg0, %c0_i32, %arg2 : i32, i32, i32
  }
  func.func @transform_2(%arg0: i32, %arg1: i32, %arg2: i32, %arg3: memref<1xi32, #tpu.memory_space<smem>>) -> (i32, i32, i32) {
    %c0_i32 = arith.constant 0 : i32
    %c0_i32_0 = arith.constant 0 : i32
    return %arg0, %c0_i32, %arg2 : i32, i32, i32
  }
  func.func @transform_3(%arg0: i32, %arg1: i32, %arg2: i32, %arg3: memref<1xi32, #tpu.memory_space<smem>>) -> (i32, i32, i32) {
    %c0_i32 = arith.constant 0 : i32
    %c0_i32_0 = arith.constant 0 : i32
    return %arg0, %arg1, %c0_i32 : i32, i32, i32
  }
}

</mosaic_0001>

<bundles_post_ra>
// kernel: tpu_custom_call.1
= control target key start
LH: loop header
LB: loop body
LE: loop exit
PB: predicated region body
PF: predicated region fallthrough
CT: control target
= control target key end

     0   :  { %10 = vsyncpa [#allocation5], 0  ;;  %s861_s0 = inlined_call_operand.<no memory space> [shape: s32[1], index: 0, kind: input, shape index: {}]   ;;  %s862_s1 = inlined_call_operand.vmem [shape: f32[2,3,16,8], index: 1, kind: input, shape index: {}]   ;;  %s863_s2 = inlined_call_operand.vmem [shape: f32[2,8,128], index: 2, kind: input, shape index: {}]   ;;  %s864_s3 = inlined_call_operand.vmem [shape: f32[2,1,128], index: 3, kind: input, shape index: {}]   ;;  %s865_s4 = inlined_call_operand.hbm [shape: f32[2,16,128], index: 4, kind: output, shape index: {}]  }
   0x1   :  { %12 = vsyncpa [#allocation5 + $0x1], 0  ;;  %s738_s15 = smov 0   ;;  %s740_s16 = smov 0  }
   0x2   :  { %s742_s17 = smov 0   ;;  %s744_s0 = smov 0  }
   0x3   :  { %s746_s18 = smov 0   ;;  %s748_s19 = smov 0  }
   0x4 LB: > { %s542_s20 = sadd.s32 4294967295, %s709_s19   ;;  %s543_s21 = sadd.s32 4294967294, %s709_s19   ;;  %s709_s19 = sphi %s748_s19, %s18_s19   ;;  %s705_s18 = sphi %s746_s18, %s872_s18   ;;  %s701_s0 = sphi %s744_s0, %s871_s0   ;;  %s697_s17 = sphi %s742_s17, %s870_s17   ;;  %s693_s16 = sphi %s740_s16, %s869_s16   ;;  %s689_s15 = sphi %s738_s15, %s868_s15  }
   0x5   : > { %s37_s22 = sadd.s32 1, %s705_s18  ;;  %s130_s23 = sadd.s32 1, %s697_s17 }
   0x6   : > { %p39_p0 = scmp.ge.s32.totalorder %s37_s22, 2  ;;  %p140_p1 = scmp.ne.s32.totalorder %s697_s17, %s693_s16 }
   0x7   : > { %p141_p2 = scmp.eq.s32.totalorder %s542_s20, 1  ;;  %p146_p3 = scmp.ne.s32.totalorder %s693_s16, %s689_s15 }
   0x8   : > { %s874_s22 = smov (%p39_p0, %s37_s22), 0  ;;  %p147_p5 = scmp.eq.s32.totalorder %s543_s21, 1 }
   0x9   : > { %p778_p4 = por %p141_p2, %p140_p1  ;;  %s125_s25 = ssub.s32 %s705_s18, %s874_s22 }
   0xa   : > { %p546_p6 = scmp.ge.s32.totalorder %s709_s19, 1  ;;  %p128_p7 = scmp.eq.s32.totalorder %s125_s25, 0 }
   0xb   : > { %p785_p8 = por %p147_p5, %p146_p3  ;;  %p197_p9 = scmp.lt.s32.totalorder %s709_s19, 3 }
   0xc   : > { %s791_s27 = scalar_select %p128_p7, %s697_s17, %s130_s23  }
   0xd   : > { %p198_p10 = pnand %p546_p6, %p197_p9 }
   0xe   : > { %p239_p11 = scmp.lt.s32.totalorder (!%p198_p10), %s701_s0, 1  ;;  %s235_s14 = sand.u32 (!%p198_p10), 1, %s693_s16  }
   0xf   : > { %201 = sbr.rel (%p198_p10) target bundleno = 202 (0xca), region = 32  ;;  %s547_s23 = sshll.u32 (!%p198_p10), %s235_s14, 4 }
  0x10   : > { %s565_s25 = sshll.u32 (!%p198_p10), %s701_s0, 4  ;;  %s237_s5 = scalar_lea.vmem (!%p198_p10), [#allocation4], %s547_s23 }
  0x11   : > { %s651_s12 = scalar_lea.hbm (!%p198_p10), %s865_s4, 32 }
  0x14   : > { %s795_s28 = scalar_select %p239_p11, %s701_s0, 1  ;;  %vm271_vm0 = vcmask 64512  }
  0x15   : > { %s416_s0 = scalar_lea.sflag [#allocation5], %s235_s14 }
  0x16   : > { %s549_s29 = sshll.u32 %s795_s28, 3  ;;  %s260_s6 = scalar_lea.vmem %s864_s3, %s795_s28 }
  0x17   : > { %s254_s9 = scalar_lea.vmem %s863_s2, %s549_s29  ;;  %s567_s10 = smul.u32 48, %s795_s28  ;;  %v626_v36 = vld [vmem:[%s260_s6] ss:$0 sm:$0xff] }
  0x18   : > { %v268_v0 = vld [vmem:[%s254_s9] sm:$0xff]  ;;  %s429_s28 = scalar_lea.hbm %s865_s4, %s565_s25  ;;  %s430_s6 = sshll.u32 %s237_s5, 4  ;;  %s431_s6 = int_to_ptr.vmem [resolvable:$true] %s430_s6 }
  0x19   : > { %363 = vmatpush.msra.mxu2 %v268_v0  ;;  %s246_s13 = scalar_lea.vmem %s862_s1, %s567_s10  ;;  %293 = vmatpush.msra.mxu0 %v268_v0  ;;  %s432_s7 = sshll.u32 %s429_s28, 4  ;;  %s433_s7 = int_to_ptr.hbm [resolvable:$true] %s432_s7 }
  0x1a   : > { %v556_v1 = vld [vmem:[%s246_s13 + $0x20] sm:$0xff]  ;;  %327 = vmatpush.msra.mxu1 %v268_v0  ;;  %v552_v3 = vld [vmem:[%s246_s13 + $0x10] sm:$0xff]  ;;  %566 = vmatpush.msra.mxu3 %v268_v0  ;;  %v270_v4 = vld [vmem:[%s246_s13 + $0x8] sm:$0xff]  ;;  %s645_s8 = sshra.s32 %s433_s7, 4  ;;  %s646_s8 = int_to_ptr.hbm [resolvable:$true] %s645_s8 }
  0x1b   : > { %v269_v2 = vld [vmem:[%s246_s13] sm:$0xff]  ;;  %558 = vmatmul.msk.f32.vlgmr.msra.gmra.mxu2 %vm271_vm0, %v556_v1  ;;  %554 = vmatmul.msk.f32.vlgmr.msra.gmra.mxu1 %vm271_vm0, %v552_v3  ;;  %v557_v5 = vld [vmem:[%s246_s13 + $0x28] sm:$0xff]  ;;  %v553_v6 = vld [vmem:[%s246_s13 + $0x18] sm:$0xff]  ;;  %s647_s9 = scalar_lea.hbm %s646_s8, 16  ;;  %p652_p1 = scmp.lt.s32.totalorder %s646_s8, %s865_s4 }
  0x1c   : > { %550 = vmatmul.msk.f32.vlgmr.msra.gmra.mxu0 %vm271_vm0, %v269_v2  ;;  %551 = vmatmul.msk.f32.vlgmr.msra.gmra.mxu3 %vm271_vm0, %v270_v4  ;;  %p648_p12 = scmp.ne.s32.totalorder %s646_s8, %s647_s9  ;;  %p653_p2 = scmp.lt.s32.totalorder %s651_s12, %s647_s9 }
  0x1e   : > { %p649_p13 = pnand %p648_p12, %p778_p4  ;;  %p654_p3 = por %p653_p2, %p652_p1 }
  0x20   : > { %p650_p0 = pneg %p649_p13 }
  0x22   : > { %p655_p5 = pnand %p654_p3, %p650_p0 }
  0x23   : > { %559 = vmatmul.msk.f32.gmra.mxu2 %vm271_vm0, %v557_v5  ;;  %555 = vmatmul.msk.f32.gmra.mxu1 %vm271_vm0, %v553_v6 }
  0x98   : > { %v329_v9 = vpop.f32.mrf.mxu1 }
  0x99   : > { %v295_v7 = vpop.f32.mrf.mxu0  ;;  %v335_v10 = vmul.f32 %v329_v9, %v329_v9 }
  0x9a   : > { %v301_v8 = vmul.f32 %v295_v7, %v295_v7 }
  0x9c   : > { %v337_v11 = vadd.f32 %v335_v10, %v301_v8 }
  0x9e   : > { %v365_v12 = vpop.f32.mrf.mxu2 }
  0x9f   : > { %v371_v13 = vmul.f32 %v365_v12, %v365_v12  ;;  %v298_v14 = vpop.f32.mrf.mxu3 }
  0xa0   : > { %v302_v16 = vmul.f32 %v298_v14, %v298_v14  ;;  %v332_v17 = vpop.f32.mrf.mxu1 }
  0xa1   : > { %v373_v15 = vadd.f32 %v371_v13, %v337_v11  ;;  %v336_v18 = vmul.f32 %v332_v17, %v332_v17 }
  0xa3   : > { %v375_v19 = vadd.f32 0.0001, %v373_v15  ;;  %v338_v20 = vadd.f32 %v336_v18, %v302_v16 }
  0xa5   : > { %627 = vrsqrt.f32 %v375_v19  ;;  %vm384_vm1 = vcmp.eq.f32.partialorder %v375_v19, inf  ;;  %v387_v35 = vand.u32 2147483648, %v375_v19  ;;  %vm386_vm2 = vcmp.eq.f32.partialorder %v375_v19, 0.0 }
  0xa6   : > { %v368_v21 = vpop.f32.mrf.mxu2 }
  0xa7   : > { %v372_v22 = vmul.f32 %v368_v21, %v368_v21 }
  0xa9   : > { %v374_v23 = vadd.f32 %v372_v22, %v338_v20 }
  0xab   : > { %v628_v24 = vpop.eup %627  ;;  %v376_v25 = vadd.f32 0.0001, %v374_v23 }
  0xac   : > { %v378_v26 = vmul.f32 %v628_v24, %v375_v19 }
  0xad   : > { %629 = vrsqrt.f32 %v376_v25  ;;  %vm396_vm3 = vcmp.eq.f32.partialorder %v376_v25, inf  ;;  %v399_v45 = vand.u32 2147483648, %v376_v25  ;;  %vm398_vm4 = vcmp.eq.f32.partialorder %v376_v25, 0.0 }
  0xae   : > { %v379_v27 = vmul.f32 %v628_v24, %v378_v26 }
  0xb0   : > { %v380_v28 = vmul.f32 0.5, %v379_v27 }
  0xb2   : > { %v381_v29 = vsub.f32 1.5, %v380_v28 }
  0xb3   : > { %v630_v30 = vpop.eup %629 }
  0xb4   : > { %v382_v31 = vmul.f32 %v628_v24, %v381_v29  ;;  %v390_v32 = vmul.f32 %v630_v30, %v376_v25 }
  0xb6   : > { %v383_v33 = vmul.f32 %v382_v31, %v375_v19  ;;  %v391_v34 = vmul.f32 %v630_v30, %v390_v32 }
  0xb8   : > { %v392_v37 = vmul.f32 0.5, %v391_v34  ;;  %v385_v38 = vsel %vm384_vm1, %v375_v19, %v383_v33 }
  0xb9   : > { %v388_v39 = vsel %vm386_vm2, %v387_v35, %v385_v38 }
  0xba   : > { %v393_v40 = vsub.f32 1.5, %v392_v37  ;;  %v401_v41 = vmin.f32 %v388_v39, 10.0 }
  0xbc   : > { %v394_v42 = vmul.f32 %v630_v30, %v393_v40  ;;  %v409_v43 = vmul.f32 %v626_v36, %v401_v41 }
  0xbe   : > { %v395_v44 = vmul.f32 %v394_v42, %v376_v25  ;;  %413 = vst [vmem:[%s237_s5] sm:$0xff] %v409_v43 }
  0xc0   : > { %v397_v46 = vsel %vm396_vm3, %v376_v25, %v395_v44 }
  0xc1   : > { %v400_v47 = vsel %vm398_vm4, %v399_v45, %v397_v46 }
  0xc2   : > { %v402_v48 = vmin.f32 %v400_v47, 10.0 }
  0xc4   : > { %v410_v49 = vmul.f32 %v626_v36, %v402_v48 }
  0xc6   : > { %414 = vst [vmem:[%s237_s5 + $0x8] sm:$0xff] %v410_v49 }
  0xc7   : > { %658 = shalt.err (!%p655_p5)
}
  0xc8   : > { %s711_s14 = smov 128   ;;  %s712_s21 = smov 8  }
  0xc9   : > { %568 = dma.vmem_to_hbm [thread:$0]  (%p778_p4), %s431_s6, 256, %s433_s7, %s416_s0, %s711_s14, %s711_s14, %s712_s21  }
  0xca PF: > { %p574_p6 = scmp.ge.s32.totalorder %s709_s19, 2  ;;  %s447_s23 = sand.u32 1, %s689_s15  }
  0xcb   : > { %s448_s25 = scalar_lea.sflag [#allocation5], %s447_s23 }
  0xcc   : > { %p571_p7 = pnand %p574_p6, %p785_p8 }
  0xce   : > { %p572_p9 = pneg %p571_p7 }
  0xd0   : > { %684 = dma.done.wait (%p572_p9), %s448_s25, 256  }
  0xd1   : > { %686 = vsyncadd (%p572_p9), %s448_s25, 4294967040  ;;  %s18_s19 = sadd.s32 1, %s709_s19   ;;  %s868_s15 = smov %s693_s16 }
  0xd2   : > { %p15_p10 = scmp.ge.s32.totalorder %s18_s19, 4   ;;  %s869_s16 = smov %s697_s17 }
  0xd3   : > { %s870_s17 = smov %s791_s27  ;;  %s871_s0 = smov %s705_s18 }
  0xd4   : > { %s872_s18 = smov %s874_s22  ;;  %17 = sbr.rel (!%p15_p10) target bundleno = 4 (0x4), region = 79 }
  0xd9   :  { %454 = vsyncpa [#allocation5], 1 }
  0xda   :  { %456 = vsyncpa [#allocation5 + $0x1], 1 }

</bundles_post_ra>
